<compile_context>
chip_gen: v6e
topology: v6e:2x2x1
jax: 0.10.0
libtpu: 0.0.40
codegen_flags: <defaults>
</compile_context>

<pallas_src>
import jax
import jax.numpy as jnp
from jax.experimental import pallas as pl
from jax.experimental.pallas import tpu as pltpu

LAMBDA_HOLE = 6.0   # opt.lambda_hole (compile-time constant)
_EPS = 1e-6         # guard against all-hole / all-valid masks (mean(m) == 0 or 1)
_LANE = 128


# ----------------------------------------------------------------------------
# Fused kernel (one grid step = one row tile, full B and C)
#   inputs : sample, flow_out, real  (B, C, rt, 128)
#            mask                    (B, 1, rt, 128)   broadcast across C in-register
#   outputs: img_prior (B, C, rt, 128)
#            partials  (1, 3) in SMEM  [sum|diff|, sum|diff|*m, sum m]
# ----------------------------------------------------------------------------
def _fused_kernel(sample_ref, flow_ref, real_ref, mask_ref, prior_ref, part_ref):
    sample = sample_ref[...]                      # (B, C, rt, L)
    hole = mask_ref[...] > 0.0                    # (B, 1, rt, L) — mask_32 binarization

    # preprocess_input() flow-prior blend, collapsed for a binary mask:
    # known pixels keep `sample`; hole pixels take clamp(flow_out,0,1) mapped to [-1,1]
    prior = jnp.where(hole, 2.0 * jnp.clip(flow_ref[...], 0.0, 1.0) - 1.0, sample)
    prior_ref[...] = prior

    # masked-L1 partial sums (accumulate in f32 regardless of input dtype)
    diff = jnp.abs(prior.astype(jnp.float32) - real_ref[...].astype(jnp.float32))
    m32 = hole.astype(jnp.float32)                # (B, 1, rt, L)
    part_ref[0, 0] = jnp.sum(diff)
    part_ref[0, 1] = jnp.sum(diff * m32)          # m broadcast over C in-register
    part_ref[0, 2] = jnp.sum(m32)                 # mask counted once (channel-invariant)


def _pick_rows_tile(R, bytes_per_row_step, budget_bytes=8 << 20):
    """Largest multiple-of-8 divisor of R whose per-step working set fits the budget."""
    max_rows = max(8, budget_bytes // max(1, bytes_per_row_step))
    t = min(R, max_rows)
    t -= t % 8
    while t >= 8:
        if R % t == 0:
            return t
        t -= 8
    return R   # R < 8 or no multiple-of-8 divisor: use full extent (always legal)


# ----------------------------------------------------------------------------
# Wrapper
# ----------------------------------------------------------------------------
def pix2pix_forward_core(sample, mask, flow_out, real_image, mu, logvar, eps,
                         *, lambda_hole=LAMBDA_HOLE):
    """Fused hot path of Pix2PixModel.forward.

    sample/flow_out/real_image: (B, C, H, W); mask: (B, 1, H, W); mu/logvar/eps: (B, Z).
    Returns (img_prior (B,C,H,W), z (B,Z), {'hole','valid','L1_loss'}).
    """
    B, C, H, W = sample.shape
    HW = H * W
    assert HW % _LANE == 0, "H*W must be a multiple of 128 (lane dimension)"
    L = _LANE
    R = HW // L
    itemsize = jnp.dtype(sample.dtype).itemsize
    # 4 image arrays (sample/flow/real/prior) + 1 mask, double-buffered
    bytes_per_row_step = (4 * C + 1) * B * L * itemsize * 2
    rows_tile = _pick_rows_tile(R, bytes_per_row_step)
    num_t = R // rows_tile

    # Contiguous reshapes only — no HBM transposes in or out.
    s4 = sample.reshape(B, C, R, L)
    f4 = flow_out.reshape(B, C, R, L)
    r4 = real_image.reshape(B, C, R, L)
    m4 = mask.reshape(B, 1, R, L)

    img_block = (B, C, rows_tile, L)
    mask_block = (B, 1, rows_tile, L)
    tile_map = lambda t: (0, 0, t, 0)

    prior4, partials = pl.pallas_call(
        _fused_kernel,
        grid=(num_t,),
        in_specs=[
            pl.BlockSpec(img_block, tile_map),     # sample
            pl.BlockSpec(img_block, tile_map),     # flow_out (ConditionalFlow stand-in)
            pl.BlockSpec(img_block, tile_map),     # real image
            pl.BlockSpec(mask_block, tile_map),    # mask (shared across channels)
        ],
        out_specs=(
            pl.BlockSpec(img_block, tile_map),                                  # img_prior
            pl.BlockSpec((1, 3), lambda t: (t, 0),
                         memory_space=pltpu.MemorySpace.SMEM),                  # partials
        ),
        out_shape=(
            jax.ShapeDtypeStruct((B, C, R, L), sample.dtype),
            jax.ShapeDtypeStruct((num_t, 3), jnp.float32),
        ),
        compiler_params=pltpu.CompilerParams(
            dimension_semantics=("parallel",)),    # megacore-shardable on v7x
    )(s4, f4, r4, m4)

    img_prior = prior4.reshape(B, C, H, W)

    # reparameterize() — tiny (B,Z); XLA fuses it trivially (hoisted out of the kernel).
    z = eps * jnp.exp(0.5 * logvar) + mu

    # Finish the masked-L1 scalars from the per-tile partial sums (plain XLA).
    sum_diff = jnp.sum(partials[:, 0])
    sum_diff_m = jnp.sum(partials[:, 1])
    sum_m = jnp.sum(partials[:, 2])
    n_img = float(B * C * HW)
    n_mask = float(B * HW)
    mean_m = sum_m / n_mask
    hole_loss = (sum_diff_m / n_img) / jnp.maximum(mean_m, _EPS)
    valid_loss = ((sum_diff - sum_diff_m) / n_img) / jnp.maximum(1.0 - mean_m, _EPS)
    l1_loss = hole_loss * lambda_hole + valid_loss

    return img_prior, z, {"hole": hole_loss, "valid": valid_loss, "L1_loss": l1_loss}


# ----------------------------------------------------------------------------
# Driver
# ----------------------------------------------------------------------------
if __name__ == "__main__":
    key = jax.random.PRNGKey(0)
    k1, k2, k3, k4, k5, k6, k7 = jax.random.split(key, 7)

    B, C, H, W, Z = 2, 3, 32, 32, 256
    image = jax.random.uniform(k1, (B, C, H, W), jnp.float32, -1.0, 1.0)      # data['image']
    sample = jax.random.uniform(k2, (B, C, H, W), jnp.float32, -1.0, 1.0)     # data['sample']
    mask = (jax.random.uniform(k3, (B, 1, H, W)) > 0.5).astype(jnp.float32)   # data['mask'] (32x32)

    # TODO(synk): ConditionalFlow (s1 normalizing flow loaded from latest_G.pth) is an
    # external pretrained network; a deterministic random stand-in provides its
    # reverse-pass output.
    flow_out = jax.random.uniform(k4, (B, C, H, W), jnp.float32, 0.0, 1.0)

    # TODO(synk): netE (SPADE VAE encoder) is an external network; mu/logvar/eps are
    # deterministic stand-ins so the reparameterization trick itself is exercised.
    mu = jax.random.normal(k5, (B, Z), jnp.float32)
    logvar = 0.1 * jax.random.normal(k6, (B, Z), jnp.float32)
    eps = jax.random.normal(k7, (B, Z), jnp.float32)

    # TODO(synk): netG / netD / VGG / GAN / KLD losses are external networks with no
    # in-script equivalent; img_prior serves as the fake-image proxy for the masked-L1 path.
    img_prior, z, losses = pix2pix_forward_core(sample, mask, flow_out, image,
                                                mu, logvar, eps)

    jax.block_until_ready((img_prior, z, losses["L1_loss"]))
    print("KERNEL_OK")
</pallas_src>

<mosaic_0001>
module attributes {stable_mosaic.version = 11 : i64} {
  func.func @_fused_kernel(%arg0: i32, %arg1: memref<2x3x8x128xf32, #tpu.memory_space<vmem>>, %arg2: memref<2x3x8x128xf32, #tpu.memory_space<vmem>>, %arg3: memref<2x3x8x128xf32, #tpu.memory_space<vmem>>, %arg4: memref<2x1x8x128xf32, #tpu.memory_space<vmem>>, %arg5: memref<2x3x8x128xf32, #tpu.memory_space<vmem>>, %arg6: memref<1x3xf32, #tpu.memory_space<smem>>) attributes {dimension_semantics = [#tpu.dimension_semantics<parallel>], iteration_bounds = array<i64: 1>, scalar_prefetch = 0 : i64, scratch_operands = 0 : i64, tpu.core_type = #tpu.core_type<tc>, window_params = [{transform_indices = @transform_0, window_bounds = array<i64: 2, 3, 8, 128>}, {transform_indices = @transform_1, window_bounds = array<i64: 2, 3, 8, 128>}, {transform_indices = @transform_2, window_bounds = array<i64: 2, 3, 8, 128>}, {transform_indices = @transform_3, window_bounds = array<i64: 2, 1, 8, 128>}, {transform_indices = @transform_4, window_bounds = array<i64: 2, 3, 8, 128>}, {transform_indices = @transform_5, window_bounds = array<i64: 1, 3>}]} {
    %c0 = arith.constant 0 : index
    %c0_0 = arith.constant 0 : index
    %c0_1 = arith.constant 0 : index
    %c0_2 = arith.constant 0 : index
    %0 = vector.load %arg1[%c0, %c0_0, %c0_1, %c0_2] : memref<2x3x8x128xf32, #tpu.memory_space<vmem>>, vector<2x3x8x128xf32>
    %c0_3 = arith.constant 0 : index
    %c0_4 = arith.constant 0 : index
    %c0_5 = arith.constant 0 : index
    %c0_6 = arith.constant 0 : index
    %1 = vector.load %arg4[%c0_3, %c0_4, %c0_5, %c0_6] : memref<2x1x8x128xf32, #tpu.memory_space<vmem>>, vector<2x1x8x128xf32>
    %cst = arith.constant 0.000000e+00 : f32
    %2 = vector.broadcast %cst : f32 to vector<2x1x8x128xf32>
    %3 = arith.cmpf ogt, %1, %2 : vector<2x1x8x128xf32>
    %c0_7 = arith.constant 0 : index
    %c0_8 = arith.constant 0 : index
    %c0_9 = arith.constant 0 : index
    %c0_10 = arith.constant 0 : index
    %4 = vector.load %arg2[%c0_7, %c0_8, %c0_9, %c0_10] : memref<2x3x8x128xf32, #tpu.memory_space<vmem>>, vector<2x3x8x128xf32>
    %cst_11 = arith.constant 0.000000e+00 : f32
    %cst_12 = arith.constant 1.000000e+00 : f32
    %5 = vector.broadcast %cst_11 : f32 to vector<2x3x8x128xf32>
    %6 = arith.maximumf %5, %4 : vector<2x3x8x128xf32>
    %7 = vector.broadcast %cst_12 : f32 to vector<2x3x8x128xf32>
    %8 = arith.minimumf %7, %6 : vector<2x3x8x128xf32>
    %cst_13 = arith.constant 2.000000e+00 : f32
    %9 = vector.broadcast %cst_13 : f32 to vector<2x3x8x128xf32>
    %10 = arith.mulf %9, %8 : vector<2x3x8x128xf32>
    %cst_14 = arith.constant 1.000000e+00 : f32
    %11 = vector.broadcast %cst_14 : f32 to vector<2x3x8x128xf32>
    %12 = arith.subf %10, %11 : vector<2x3x8x128xf32>
    %13 = vector.shape_cast %3 : vector<2x1x8x128xi1> to vector<2x1x8x128xi1>
    %14 = vector.broadcast %13 : vector<2x1x8x128xi1> to vector<2x3x8x128xi1>
    %15 = arith.select %14, %12, %0 : vector<2x3x8x128xi1>, vector<2x3x8x128xf32>
    %c0_15 = arith.constant 0 : index
    %c0_16 = arith.constant 0 : index
    %c0_17 = arith.constant 0 : index
    %c0_18 = arith.constant 0 : index
    %16 = vector.load %arg5[%c0_15, %c0_16, %c0_17, %c0_18] : memref<2x3x8x128xf32, #tpu.memory_space<vmem>>, vector<2x3x8x128xf32>
    tpu.vector_store %arg5[%c0_15, %c0_16, %c0_17, %c0_18], %15 {strides = array<i32>} : memref<2x3x8x128xf32, #tpu.memory_space<vmem>>, vector<2x3x8x128xf32>,
    %c0_19 = arith.constant 0 : index
    %c0_20 = arith.constant 0 : index
    %c0_21 = arith.constant 0 : index
    %c0_22 = arith.constant 0 : index
    %17 = vector.load %arg3[%c0_19, %c0_20, %c0_21, %c0_22] : memref<2x3x8x128xf32, #tpu.memory_space<vmem>>, vector<2x3x8x128xf32>
    %18 = arith.subf %15, %17 : vector<2x3x8x128xf32>
    %19 = math.absf %18 : vector<2x3x8x128xf32>
    %20 = arith.extui %3 : vector<2x1x8x128xi1> to vector<2x1x8x128xi32>
    %21 = arith.sitofp %20 : vector<2x1x8x128xi32> to vector<2x1x8x128xf32>
    %22 = vector.shape_cast %19 : vector<2x3x8x128xf32> to vector<1x2x3x8x128xf32>
    %cst_23 = arith.constant dense<0.000000e+00> : vector<1xf32>
    %23 = vector.multi_reduction <add>, %22, %cst_23 [1, 2, 3, 4] : vector<1x2x3x8x128xf32> to vector<1xf32>
    %24 = vector.shape_cast %23 : vector<1xf32> to vector<1x1x1x1x1xf32>
    %25 = vector.extract %24[0, 0, 0, 0, 0] : f32 from vector<1x1x1x1x1xf32>
    %c0_24 = arith.constant 0 : index
    %c0_25 = arith.constant 0 : index
    %26 = memref.load %arg6[%c0_24, %c0_25] : memref<1x3xf32, #tpu.memory_space<smem>>
    memref.store %25, %arg6[%c0_24, %c0_25] : memref<1x3xf32, #tpu.memory_space<smem>>
    %27 = vector.broadcast %21 : vector<2x1x8x128xf32> to vector<2x3x8x128xf32>
    %28 = arith.mulf %19, %27 : vector<2x3x8x128xf32>
    %29 = vector.shape_cast %28 : vector<2x3x8x128xf32> to vector<1x2x3x8x128xf32>
    %cst_26 = arith.constant dense<0.000000e+00> : vector<1xf32>
    %30 = vector.multi_reduction <add>, %29, %cst_26 [1, 2, 3, 4] : vector<1x2x3x8x128xf32> to vector<1xf32>
    %31 = vector.shape_cast %30 : vector<1xf32> to vector<1x1x1x1x1xf32>
    %32 = vector.extract %31[0, 0, 0, 0, 0] : f32 from vector<1x1x1x1x1xf32>
    %c0_27 = arith.constant 0 : index
    %c1 = arith.constant 1 : index
    %33 = memref.load %arg6[%c0_27, %c1] : memref<1x3xf32, #tpu.memory_space<smem>>
    memref.store %32, %arg6[%c0_27, %c1] : memref<1x3xf32, #tpu.memory_space<smem>>
    %34 = vector.shape_cast %21 : vector<2x1x8x128xf32> to vector<1x2x1x8x128xf32>
    %cst_28 = arith.constant dense<0.000000e+00> : vector<1xf32>
    %35 = vector.multi_reduction <add>, %34, %cst_28 [1, 2, 3, 4] : vector<1x2x1x8x128xf32> to vector<1xf32>
    %36 = vector.shape_cast %35 : vector<1xf32> to vector<1x1x1x1x1xf32>
    %37 = vector.extract %36[0, 0, 0, 0, 0] : f32 from vector<1x1x1x1x1xf32>
    %c0_29 = arith.constant 0 : index
    %c2 = arith.constant 2 : index
    %38 = memref.load %arg6[%c0_29, %c2] : memref<1x3xf32, #tpu.memory_space<smem>>
    memref.store %37, %arg6[%c0_29, %c2] : memref<1x3xf32, #tpu.memory_space<smem>>
    return
  }
  func.func @transform_0(%arg0: i32) -> (i32, i32, i32, i32) {
    %c0_i32 = arith.constant 0 : i32
    %c0_i32_0 = arith.constant 0 : i32
    %c0_i32_1 = arith.constant 0 : i32
    %c0_i32_2 = arith.constant 0 : i32
    return %c0_i32, %c0_i32_0, %arg0, %c0_i32_1 : i32, i32, i32, i32
  }
  func.func @transform_1(%arg0: i32) -> (i32, i32, i32, i32) {
    %c0_i32 = arith.constant 0 : i32
    %c0_i32_0 = arith.constant 0 : i32
    %c0_i32_1 = arith.constant 0 : i32
    %c0_i32_2 = arith.constant 0 : i32
    return %c0_i32, %c0_i32_0, %arg0, %c0_i32_1 : i32, i32, i32, i32
  }
  func.func @transform_2(%arg0: i32) -> (i32, i32, i32, i32) {
    %c0_i32 = arith.constant 0 : i32
    %c0_i32_0 = arith.constant 0 : i32
    %c0_i32_1 = arith.constant 0 : i32
    %c0_i32_2 = arith.constant 0 : i32
    return %c0_i32, %c0_i32_0, %arg0, %c0_i32_1 : i32, i32, i32, i32
  }
  func.func @transform_3(%arg0: i32) -> (i32, i32, i32, i32) {
    %c0_i32 = arith.constant 0 : i32
    %c0_i32_0 = arith.constant 0 : i32
    %c0_i32_1 = arith.constant 0 : i32
    %c0_i32_2 = arith.constant 0 : i32
    return %c0_i32, %c0_i32_0, %arg0, %c0_i32_1 : i32, i32, i32, i32
  }
  func.func @transform_4(%arg0: i32) -> (i32, i32, i32, i32) {
    %c0_i32 = arith.constant 0 : i32
    %c0_i32_0 = arith.constant 0 : i32
    %c0_i32_1 = arith.constant 0 : i32
    %c0_i32_2 = arith.constant 0 : i32
    return %c0_i32, %c0_i32_0, %arg0, %c0_i32_1 : i32, i32, i32, i32
  }
  func.func @transform_5(%arg0: i32) -> (i32, i32) {
    %c0_i32 = arith.constant 0 : i32
    %c0_i32_0 = arith.constant 0 : i32
    return %arg0, %c0_i32 : i32, i32
  }
}

</mosaic_0001>

<bundles_post_ra>
// kernel: tpu_custom_call.1
= control target key start
LH: loop header
LB: loop body
LE: loop exit
PB: predicated region body
PF: predicated region fallthrough
CT: control target
= control target key end

     0   :  { %11 = vsyncpa [#allocation3], 0  ;;  %s468_s0 = inlined_call_operand.hbm [shape: f32[2,3,8,128], index: 0, kind: input, shape index: {}]   ;;  %s469_s1 = inlined_call_operand.hbm [shape: f32[2,3,8,128], index: 1, kind: input, shape index: {}]   ;;  %s470_s2 = inlined_call_operand.hbm [shape: f32[2,3,8,128], index: 2, kind: input, shape index: {}]   ;;  %s471_s3 = inlined_call_operand.hbm [shape: f32[2,1,8,128], index: 3, kind: input, shape index: {}]   ;;  %s472_s4 = inlined_call_operand.hbm [shape: f32[2,3,8,128], index: 4, kind: output, shape index: {0}]   ;;  %s473_s5 = inlined_call_operand.hbm [shape: f32[1,3], index: 5, kind: output, shape index: {1}]  }
   0x1   :  { %12 = vsyncpa [#allocation7], 0 }
   0x2   :  { %13 = vsyncpa [#allocation10], 0 }
   0x3   :  { %14 = vsyncpa [#allocation4], 0 }
   0x4   :  { %15 = vsyncpa [#allocation5], 0  ;;  %s375_s18 = smov [#allocation6]   ;;  %s376_s20 = smov [#allocation2]  }
   0x5   :  { %s33_s19 = sshll.u32 %s375_s18, 4  ;;  %s21_s21 = sshll.u32 %s376_s20, 4  ;;  %s34_s19 = int_to_ptr.vmem [resolvable:$true] %s33_s19  ;;  %s22_s21 = int_to_ptr.vmem [resolvable:$true] %s21_s21 }
   0x6   :  { %s265_s22 = scalar_lea.vmem %s34_s19, 768  ;;  %p270_p1 = scmp.lt.s32.totalorder %s34_s19, %s34_s19 }
   0x7   :  { %p266_p0 = scmp.ne.s32.totalorder %s34_s19, %s265_s22  ;;  %p271_p2 = scmp.lt.s32.totalorder %s265_s22, %s265_s22 }
   0x9   :  { %p272_p3 = por %p271_p2, %p270_p1 }
   0xb   :  { %p273_p4 = pnand %p272_p3, %p266_p0 }
   0xd   :  { %276 = shalt.err (!%p273_p4)
}
   0xe   :  { %s377_s23 = smov 128   ;;  %s378_s24 = smov 8  }
   0xf   :  { %39 = dma.hbm_to_vmem [thread:$0]  %s469_s1, 768, %s34_s19, [#allocation7], %s377_s23, %s377_s23, %s378_s24  }
  0x10   :  { %s285_s27 = scalar_lea.vmem %s22_s21, 768  ;;  %p290_p6 = scmp.lt.s32.totalorder %s22_s21, %s22_s21 }
  0x11   :  { %p286_p5 = scmp.ne.s32.totalorder %s22_s21, %s285_s27  ;;  %p291_p7 = scmp.lt.s32.totalorder %s285_s27, %s285_s27 }
  0x13   :  { %p292_p8 = por %p291_p7, %p290_p6 }
  0x15   :  { %p293_p9 = pnand %p292_p8, %p286_p5 }
  0x17   :  { %296 = shalt.err (!%p293_p9)
}
  0x18   :  { %27 = dma.hbm_to_vmem [thread:$0]  %s468_s0, 768, %s22_s21, [#allocation3], %s377_s23, %s377_s23, %s378_s24  }
  0x19   :  { %s379_s30 = smov [#allocation8]   ;;  %s380_s7 = smov [#allocation9]  }
  0x1a   :  { %s45_s6 = sshll.u32 %s379_s30, 4  ;;  %s57_s8 = sshll.u32 %s380_s7, 4  ;;  %s46_s6 = int_to_ptr.vmem [resolvable:$true] %s45_s6  ;;  %s58_s8 = int_to_ptr.vmem [resolvable:$true] %s57_s8 }
  0x1b   :  { %s305_s1 = scalar_lea.vmem %s46_s6, 768  ;;  %p310_p11 = scmp.lt.s32.totalorder %s46_s6, %s46_s6 }
  0x1c   :  { %p306_p10 = scmp.ne.s32.totalorder %s46_s6, %s305_s1  ;;  %p311_p12 = scmp.lt.s32.totalorder %s305_s1, %s305_s1 }
  0x1e   :  { %p312_p13 = por %p311_p12, %p310_p11 }
  0x20   :  { %p313_p0 = pnand %p312_p13, %p306_p10 }
  0x22   :  { %316 = shalt.err (!%p313_p0)
}
  0x23   :  { %51 = dma.hbm_to_vmem [thread:$0]  %s470_s2, 768, %s46_s6, [#allocation7], %s377_s23, %s377_s23, %s378_s24  }
  0x24   :  { %s325_s0 = scalar_lea.vmem %s58_s8, 256  ;;  %p330_p2 = scmp.lt.s32.totalorder %s58_s8, %s58_s8 }
  0x25   :  { %p326_p1 = scmp.ne.s32.totalorder %s58_s8, %s325_s0  ;;  %p331_p3 = scmp.lt.s32.totalorder %s325_s0, %s325_s0 }
  0x27   :  { %p332_p4 = por %p331_p3, %p330_p2 }
  0x29   :  { %p333_p5 = pnand %p332_p4, %p326_p1 }
  0x2b   :  { %336 = shalt.err (!%p333_p5)
}
  0x2c   :  { %63 = dma.hbm_to_vmem [thread:$0]  %s471_s3, 256, %s58_s8, [#allocation10], %s377_s23, %s377_s23, %s378_s24  }
  0x2d   :  { %365 = dma.done.wait [#allocation3], 768  }
  0x2e   :  { %366 = vsyncadd [#allocation3], 4294966528 }
  0x2f   :  { %367 = dma.done.wait [#allocation7], 1536  }
  0x30   :  { %368 = vsyncadd [#allocation7], 4294965760 }
  0x31   :  { %369 = dma.done.wait [#allocation10], 256  }
  0x32   :  { %370 = vsyncadd [#allocation10], 4294967040  ;;  %v82_v0 = vld [vmem:[#allocation9] sm:$0xff]  ;;  %v438_v1 = vld [vmem:[#allocation9 + $0x8] sm:$0xff]  ;;  %v381_v8 = vmov 0.0   ;;  %s382_s2 = smov [#allocation11]  }
  0x33   :  { %v86_v2 = vld [vmem:[#allocation6] sm:$0xff]  ;;  %vm84_vm0 = vcmp.gt.f32.partialorder %v82_v0, 0.0  ;;  %vm85_vm1 = vcmp.gt.f32.partialorder %v438_v1, 0.0  ;;  %v87_v3 = vld [vmem:[#allocation6 + $0x8] sm:$0xff]  ;;  %v88_v4 = vld [vmem:[#allocation6 + $0x10] sm:$0xff]  ;;  %s207_s3 = sshll.u32 %s382_s2, 4  ;;  %s208_s3 = int_to_ptr.vmem [resolvable:$true] %s207_s3 }
  0x34   :  { %v92_v5 = vmax.f32 %v86_v2, 0.0  ;;  %v93_v6 = vmax.f32 %v87_v3, 0.0  ;;  %v94_v7 = vmax.f32 %v88_v4, 0.0  ;;  %v240_v9 = vsel %vm84_vm0, 1.0, %v381_v8  ;;  %v89_v16 = vld [vmem:[#allocation6 + $0x18] sm:$0xff]  ;;  %v90_v17 = vld [vmem:[#allocation6 + $0x20] sm:$0xff]  ;;  %p342_p7 = scmp.lt.s32.totalorder %s208_s3, %s208_s3 }
  0x35   :  { %v444_v10 = vsel %vm85_vm1, 1.0, %v381_v8  ;;  %v91_v18 = vld [vmem:[#allocation6 + $0x28] sm:$0xff]  ;;  %v76_v21 = vld [vmem:[#allocation2] sm:$0xff]  ;;  %v95_v22 = vmax.f32 %v89_v16, 0.0  ;;  %v96_v23 = vmax.f32 %v90_v17, 0.0  ;;  %v77_v26 = vld [vmem:[#allocation2 + $0x8] sm:$0xff] }
  0x36   :  { %v98_v11 = vmin.f32 %v92_v5, 1.0  ;;  %v190_v12 = vadd.f32 %v444_v10, %v240_v9  ;;  %v99_v13 = vmin.f32 %v93_v6, 1.0  ;;  %v100_v14 = vmin.f32 %v94_v7, 1.0  ;;  %v132_v25 = vld [vmem:[#allocation8] sm:$0xff]  ;;  %v78_v27 = vld [vmem:[#allocation2 + $0x10] sm:$0xff]  ;;  %v133_v31 = vld [vmem:[#allocation8 + $0x8] sm:$0xff] }
  0x37   :  { %v97_v28 = vmax.f32 %v91_v18, 0.0  ;;  %v134_v32 = vld [vmem:[#allocation8 + $0x10] sm:$0xff]  ;;  %v101_v33 = vmin.f32 %v95_v22, 1.0  ;;  %v102_v34 = vmin.f32 %v96_v23, 1.0  ;;  %v79_v43 = vld [vmem:[#allocation2 + $0x18] sm:$0xff]  ;;  %v80_v44 = vld [vmem:[#allocation2 + $0x20] sm:$0xff] }
  0x38   :  { %v104_v15 = vmul.f32 2.0, %v98_v11  ;;  %191 = vadd.xlane.f32.xlu1 %v190_v12  ;;  %v105_v19 = vmul.f32 2.0, %v99_v13  ;;  %v106_v20 = vmul.f32 2.0, %v100_v14  ;;  %v81_v45 = vld [vmem:[#allocation2 + $0x28] sm:$0xff]  ;;  %v135_v50 = vld [vmem:[#allocation8 + $0x18] sm:$0xff]  ;;  %v136_v51 = vld [vmem:[#allocation8 + $0x20] sm:$0xff] }
  0x39   :  { %v103_v36 = vmin.f32 %v97_v28, 1.0  ;;  %v107_v40 = vmul.f32 2.0, %v101_v33  ;;  %v108_v46 = vmul.f32 2.0, %v102_v34  ;;  %v137_v52 = vld [vmem:[#allocation8 + $0x28] sm:$0xff]  ;;  %s337_s13 = scalar_lea.vmem %s208_s3, 768 }
  0x3a   :  { %v234_v24 = vadd.f32 -1.0, %v104_v15  ;;  %v235_v29 = vadd.f32 -1.0, %v105_v19  ;;  %v236_v30 = vadd.f32 -1.0, %v106_v20  ;;  %p338_p6 = scmp.ne.s32.totalorder %s208_s3, %s337_s13  ;;  %p343_p8 = scmp.lt.s32.totalorder %s337_s13, %s337_s13 }
  0x3b   :  { %v109_v47 = vmul.f32 2.0, %v103_v36  ;;  %v237_v49 = vadd.f32 -1.0, %v107_v40  ;;  %v238_v55 = vadd.f32 -1.0, %v108_v46 }
  0x3c   :  { %v120_v35 = vsel %vm84_vm0, %v234_v24, %v76_v21  ;;  %v121_v37 = vsel %vm84_vm0, %v235_v29, %v77_v26  ;;  %v122_v38 = vsel %vm84_vm0, %v236_v30, %v78_v27  ;;  %p344_p9 = por %p343_p8, %p342_p7 }
  0x3d   :  { %126 = vst [vmem:[#allocation11] sm:$0xff] %v120_v35  ;;  %v138_v39 = vsub.f32 %v120_v35, %v132_v25  ;;  %127 = vst [vmem:[#allocation11 + $0x8] sm:$0xff] %v121_v37  ;;  %v139_v41 = vsub.f32 %v121_v37, %v133_v31  ;;  %v140_v42 = vsub.f32 %v122_v38, %v134_v32  ;;  %v239_v56 = vadd.f32 -1.0, %v109_v47 }
  0x3e   :  { %128 = vst [vmem:[#allocation11 + $0x10] sm:$0xff] %v122_v38  ;;  %v123_v58 = vsel %vm85_vm1, %v237_v49, %v79_v43  ;;  %v124_v61 = vsel %vm85_vm1, %v238_v55, %v80_v44  ;;  %p345_p10 = pnand %p344_p9, %p338_p6 }
  0x3f   :  { %v144_v48 = vand.u32 2147483647, %v138_v39  ;;  %v145_v53 = vand.u32 2147483647, %v139_v41  ;;  %v146_v54 = vand.u32 2147483647, %v140_v42  ;;  %v125_v62 = vsel %vm85_vm1, %v239_v56, %v81_v45 }
  0x40   :  { %129 = vst [vmem:[#allocation11 + $0x18] sm:$0xff] %v123_v58  ;;  %130 = vst [vmem:[#allocation11 + $0x20] sm:$0xff] %v124_v61  ;;  %v141_v63 = vsub.f32 %v123_v58, %v135_v50  ;;  %v142_v0 = vsub.f32 %v124_v61, %v136_v51  ;;  %v143_v2 = vsub.f32 %v125_v62, %v137_v52 }
  0x41   :  { %v168_v57 = vmul.f32 %v240_v9, %v144_v48  ;;  %v169_v59 = vmul.f32 %v240_v9, %v145_v53  ;;  %v170_v60 = vmul.f32 %v240_v9, %v146_v54  ;;  %131 = vst [vmem:[#allocation11 + $0x28] sm:$0xff] %v125_v62  ;;  %v152_v3 = vadd.f32 %v145_v53, %v144_v48 }
  0x42   :  { %v147_v5 = vand.u32 2147483647, %v141_v63  ;;  %v148_v6 = vand.u32 2147483647, %v142_v0  ;;  %v149_v11 = vand.u32 2147483647, %v143_v2 }
  0x43   :  { %v174_v4 = vadd.f32 %v169_v59, %v168_v57  ;;  %v153_v7 = vadd.f32 %v152_v3, %v146_v54 }
  0x44   :  { %v171_v12 = vmul.f32 %v444_v10, %v147_v5  ;;  %v172_v13 = vmul.f32 %v444_v10, %v148_v6  ;;  %v173_v14 = vmul.f32 %v444_v10, %v149_v11 }
  0x45   :  { %v175_v8 = vadd.f32 %v174_v4, %v170_v60  ;;  %v154_v9 = vadd.f32 %v153_v7, %v147_v5 }
  0x47   :  { %v155_v1 = vadd.f32 %v154_v9, %v148_v6  ;;  %v176_v15 = vadd.f32 %v175_v8, %v171_v12 }
  0x49   :  { %v156_v16 = vadd.f32 %v155_v1, %v149_v11  ;;  %v177_v17 = vadd.f32 %v176_v15, %v172_v13 }
  0x4b   :  { %157 = vadd.xlane.f32.xlu0 %v156_v16  ;;  %v178_v18 = vadd.f32 %v177_v17, %v173_v14 }
  0x4f   :  { %179 = vadd.xlane.f32.xlu0 %v178_v18 }
  0x50   :  { %348 = shalt.err (!%p345_p10)
}
  0x51   :  { %213 = dma.vmem_to_hbm [thread:$0]  %s208_s3, 768, %s472_s4, [#allocation4], %s377_s23, %s377_s23, %s378_s24  }
  0x52   :  { %s383_s18 = smov [#allocation12]  }
  0xc1   :  { %v192_v10 = vpop.xlane.xlu1 %191 }
  0xc2   :  { %v193_v19 = vrot.slane %v192_v10, 4 }
  0xc4   :  { %v194_v20 = vadd.f32 %v193_v19, %v192_v10 }
  0xc6   :  { %v195_v24 = vrot.slane %v194_v20, 2 }
  0xc8   :  { %v196_v30 = vadd.f32 %v195_v24, %v194_v20 }
  0xca   :  { %v197_v35 = vrot.slane %v196_v30, 1 }
  0xcc   :  { %v198_v38 = vadd.f32 %v197_v35, %v196_v30 }
  0xd4   :  { %v158_v21 = vpop.xlane.xlu0 %157 }
  0xd5   :  { %v159_v22 = vrot.slane %v158_v21, 4 }
  0xd7   :  { %v160_v23 = vadd.f32 %v159_v22, %v158_v21 }
  0xd8   :  { %v180_v25 = vpop.xlane.xlu0 %179 }
  0xd9   :  { %v161_v26 = vrot.slane %v160_v23, 2  ;;  %v181_v27 = vrot.slane %v180_v25, 4 }
  0xdb   :  { %v182_v28 = vadd.f32 %v181_v27, %v180_v25  ;;  %v162_v29 = vadd.f32 %v161_v26, %v160_v23 }
  0xdd   :  { %v183_v31 = vrot.slane %v182_v28, 2  ;;  %v163_v32 = vrot.slane %v162_v29, 1 }
  0xdf   :  { %v184_v33 = vadd.f32 %v183_v31, %v182_v28  ;;  %v164_v34 = vadd.f32 %v163_v32, %v162_v29 }
  0xe1   :  { %242 = vpush %v164_v34  ;;  %v185_v36 = vrot.slane %v184_v33, 1 }
  0xe3   :  { %v186_v37 = vadd.f32 %v185_v36, %v184_v33 }
  0xe5   :  { %244 = vpush %v186_v37 }
  0xe6   :  { %246 = vpush %v198_v38 }
 0x112   :  { %s243_s4 = spop %242 }
 0x113   :  { %167 = sst [smem:[#allocation12]] %s243_s4 }
 0x116   :  { %s245_s16 = spop %244 }
 0x117   :  { %189 = sst [smem:[#allocation12 + $0x1]] %s245_s16  ;;  %s247_s17 = spop %246 }
 0x118   :  { %201 = sst [smem:[#allocation12 + $0x2]] %s247_s17 }
 0x119   :  { %221 = dma.smem_to_hbm %s383_s18, 16, %s473_s5, [#allocation5]  }
 0x11a   :  { %371 = dma.done.wait [#allocation4], 768  }
 0x11b   :  { %372 = vsyncadd [#allocation4], 4294966528 }
 0x11c   :  { %373 = dma.done.wait [#allocation5], 16  }
 0x11d   :  { %374 = vsyncadd [#allocation5], 4294967280 }
 0x11e   :  { %228 = sfence }
 0x11f   :  { %229 = vsyncpa [#allocation3], 1 }
 0x120   :  { %230 = vsyncpa [#allocation7], 1 }
 0x121   :  { %231 = vsyncpa [#allocation10], 1 }
 0x122   :  { %232 = vsyncpa [#allocation4], 1 }
 0x123   :  { %233 = vsyncpa [#allocation5], 1 }

</bundles_post_ra>
